<compile_context>
chip_gen: v7x
topology: tpu7x:2x2x1
jax: 0.10.0
libtpu: 0.0.40
codegen_flags: <defaults>
</compile_context>

<pallas_src>
import functools

import jax
import jax.numpy as jnp
from jax.experimental import pallas as pl
from jax.experimental.pallas import tpu as pltpu

_FEAT_PAD = 8  # augmented 5-wide point feature zero-padded to one sublane tile


def _distances_kernel_nomask(eps, a_ref, bt_ref, o_ref):
    # a_ref : (TI, 8) rows  [  x,   y,   z, 1, |x|^2 + eps, 0, 0, 0]
    # bt_ref: ( 8, TJ) cols [-2x, -2y, -2z, |x|^2, 1,       0, 0, 0]^T
    # a_i . b_j = |x_i|^2 + |x_j|^2 - 2 x_i.x_j + eps = d^2 + eps   (single MXU op)
    d2 = jnp.dot(a_ref[...], bt_ref[...], preferred_element_type=jnp.float32)
    o_ref[...] = jnp.sqrt(jnp.maximum(d2, eps)).astype(o_ref.dtype)


def _distances_kernel_masked(eps, a_ref, bt_ref, mcol_ref, mrow_ref, o_ref):
    d2 = jnp.dot(a_ref[...], bt_ref[...], preferred_element_type=jnp.float32)
    d = jnp.sqrt(jnp.maximum(d2, eps))
    mcol = mcol_ref[...].astype(jnp.float32)   # (TI, 1)
    mrow = mrow_ref[...].astype(jnp.float32)   # (1, TJ)
    o_ref[...] = ((d * mcol) * mrow).astype(o_ref.dtype)


def _round_up(x, m):
    return ((x + m - 1) // m) * m


def _default_tiles():
    kind = ""
    try:
        kind = jax.devices()[0].device_kind.lower()
    except Exception:
        pass
    if "v7" in kind or "tpu7" in kind:
        # v7x: ~3.2 TB/s HBM per TC -> use 8 MiB output tiles to amortize the
        # ~0.35us per-grid-step overhead.  Do NOT use these on v5e.
        return 1024, 2048
    return 512, 1024


def distances(X, mask=None, distance_eps=0.001, *, out_dtype=None,
              tile_i=None, tile_j=None):
    """Pairwise Euclidean distances (dim=-2). X: [B, L, 3]; mask: [B, L] or None."""
    X = jnp.asarray(X)
    B, L, C = X.shape
    assert C == 3, "kernel is specialized to 3-D coordinates (dim=-2 layout)"
    eps = float(distance_eps)
    out_dtype = jnp.dtype(out_dtype) if out_dtype is not None else X.dtype

    ti_d, tj_d = _default_tiles()
    TI = tile_i if tile_i is not None else min(ti_d, _round_up(L, 8))
    TJ = tile_j if tile_j is not None else min(tj_d, _round_up(L, 128))

    gi, gj = pl.cdiv(L, TI), pl.cdiv(L, TJ)
    Li, Lj = gi * TI, gj * TJ     # input pads -> every input block is fully in-bounds

    Xf = X.astype(jnp.float32)
    mf = None if mask is None else jnp.asarray(mask).astype(jnp.float32)

    # Translation-invariant centering keeps |xi|^2 + |xj|^2 - 2 xi.xj well
    # conditioned in f32 (avoids cancellation for near-duplicate points).
    if mf is None:
        center = jnp.mean(Xf, axis=1, keepdims=True)
    else:
        w = mf[:, :, None]
        center = jnp.sum(Xf * w, axis=1, keepdims=True) / jnp.maximum(
            jnp.sum(w, axis=1, keepdims=True), 1.0)
    Xc = Xf - center
    sq = jnp.sum(Xc * Xc, axis=-1, keepdims=True)             # [B, L, 1]
    ones = jnp.ones_like(sq)

    # Per-point scalar work hoisted here (O(B*L), executed once).
    A = jnp.concatenate([Xc, ones, sq + eps], axis=-1)         # [B, L, 5]
    Bv = jnp.concatenate([-2.0 * Xc, sq, ones], axis=-1)       # [B, L, 5]
    Ap = jnp.pad(A, ((0, 0), (0, Li - L), (0, _FEAT_PAD - A.shape[-1])))    # [B, Li, 8]
    Bp = jnp.pad(Bv, ((0, 0), (0, Lj - L), (0, _FEAT_PAD - Bv.shape[-1])))  # [B, Lj, 8]
    BT = jnp.transpose(Bp, (0, 2, 1))                           # [B, 8, Lj]

    grid = (B, gi, gj)
    dim_sem = ("parallel", "parallel", "parallel")

    itemsize = jnp.dtype(out_dtype).itemsize
    cost = pl.CostEstimate(
        flops=int(B * L * L * (2 * _FEAT_PAD + 4)),
        transcendentals=int(B * L * L),
        bytes_accessed=int(B * L * L * itemsize
                           + B * (Li + Lj) * _FEAT_PAD * 4
                           + (B * (Li + Lj) * 4 if mask is not None else 0)),
    )

    a_spec = pl.BlockSpec((None, TI, _FEAT_PAD), lambda b, i, j: (b, i, 0))
    bt_spec = pl.BlockSpec((None, _FEAT_PAD, TJ), lambda b, i, j: (b, 0, j))
    o_spec = pl.BlockSpec((None, TI, TJ), lambda b, i, j: (b, i, j))
    out_shape = jax.ShapeDtypeStruct((B, L, L), out_dtype)   # unpadded; edges masked

    # Explicit VMEM budget only when big tiles could stress the scoped default
    # (v5e default is 16 MiB); stays well under v7x's 64 MiB physical VMEM.
    vmem_need = 2 * TI * TJ * itemsize + (2 << 20)
    cp_kwargs = dict(dimension_semantics=dim_sem)
    if vmem_need > (12 << 20):
        cp_kwargs["vmem_limit_bytes"] = int(min(max(vmem_need + (8 << 20), 32 << 20),
                                                48 << 20))
    compiler_params = pltpu.CompilerParams(**cp_kwargs)

    if mask is None:
        return pl.pallas_call(
            functools.partial(_distances_kernel_nomask, eps),
            out_shape=out_shape,
            grid_spec=pltpu.PrefetchScalarGridSpec(
                num_scalar_prefetch=0, grid=grid,
                in_specs=[a_spec, bt_spec], out_specs=o_spec),
            compiler_params=compiler_params,
            cost_estimate=cost,
        )(Ap, BT)

    m_col = jnp.pad(mf, ((0, 0), (0, Li - L)))[:, :, None]      # [B, Li, 1]
    m_row = jnp.pad(mf, ((0, 0), (0, Lj - L)))[:, None, :]      # [B, 1, Lj]
    mc_spec = pl.BlockSpec((None, TI, 1), lambda b, i, j: (b, i, 0))
    mr_spec = pl.BlockSpec((None, 1, TJ), lambda b, i, j: (b, 0, j))
    return pl.pallas_call(
        functools.partial(_distances_kernel_masked, eps),
        out_shape=out_shape,
        grid_spec=pltpu.PrefetchScalarGridSpec(
            num_scalar_prefetch=0, grid=grid,
            in_specs=[a_spec, bt_spec, mc_spec, mr_spec], out_specs=o_spec),
        compiler_params=compiler_params,
        cost_estimate=cost,
    )(Ap, BT, m_col, m_row)


def _reference(X, mask=None, eps=0.001):
    # Pure-JAX reference mirroring the PyTorch forward (dim=-2).
    dX = X[..., None, :, :] - X[..., :, None, :]
    D2 = jnp.sum(dX ** 2, axis=-1)
    D = jnp.sqrt(D2 + eps)
    if mask is not None:
        D = (mask[..., :, None] * mask[..., None, :]) * D
    return D


if __name__ == "__main__":
    key = jax.random.PRNGKey(0)
    kx, km, kx2, km2 = jax.random.split(key, 4)

    # Small shapes consistent with the module: batch=2, length=8, coords=3.
    B, L = 2, 8
    X = jax.random.normal(kx, (B, L, 3), dtype=jnp.float32)
    mask = (jax.random.uniform(km, (B, L)) > 0.3).astype(jnp.float32)

    D = jax.block_until_ready(distances(X, mask))
    D_ref = _reference(X, mask)
    assert D.shape == (B, L, L)
    assert jnp.allclose(D, D_ref, atol=1e-4, rtol=1e-4), "mismatch vs reference (masked)"

    # No-mask path (dedicated kernel).
    D_nm = jax.block_until_ready(distances(X))
    assert jnp.allclose(D_nm, _reference(X), atol=1e-4, rtol=1e-4), "mismatch (no mask)"

    # Non-128-multiple length exercises the cdiv grid + ragged (edge-masked) output.
    B2, L2 = 2, 200
    X2 = jax.random.normal(kx2, (B2, L2, 3), dtype=jnp.float32)
    mask2 = (jax.random.uniform(km2, (B2, L2)) > 0.3).astype(jnp.float32)
    D2 = jax.block_until_ready(distances(X2, mask2))
    assert D2.shape == (B2, L2, L2)
    assert jnp.allclose(D2, _reference(X2, mask2), atol=1e-4, rtol=1e-4), "mismatch (ragged)"

    # Force a multi-tile grid with ragged edge blocks in both i and j.
    D2t = jax.block_until_ready(distances(X2, mask2, tile_i=128, tile_j=128))
    assert jnp.allclose(D2t, _reference(X2, mask2), atol=1e-4, rtol=1e-4), "mismatch (multi-tile)"

    # bf16 output path (halves HBM writeback); f32 math inside the kernel.
    L3 = 256
    X3 = jax.random.normal(kx2, (2, L3, 3), dtype=jnp.float32)
    D3 = jax.block_until_ready(distances(X3, out_dtype=jnp.bfloat16))
    assert D3.dtype == jnp.bfloat16
    assert jnp.allclose(D3.astype(jnp.float32), _reference(X3),
                        atol=5e-2, rtol=5e-2), "mismatch (bf16 output)"

    print("KERNEL_OK")
</pallas_src>

<mosaic_0001>
module attributes {stable_mosaic.version = 11 : i64} {
  func.func @_distances_kernel_masked(%arg0: i32, %arg1: i32, %arg2: i32, %arg3: memref<1x8x8xf32, #tpu.memory_space<vmem>>, %arg4: memref<1x8x128xf32, #tpu.memory_space<vmem>>, %arg5: memref<1x8x1xf32, #tpu.memory_space<vmem>>, %arg6: memref<1x1x128xf32, #tpu.memory_space<vmem>>, %arg7: memref<1x8x128xf32, #tpu.memory_space<vmem>>) attributes {dimension_semantics = [#tpu.dimension_semantics<parallel>, #tpu.dimension_semantics<parallel>, #tpu.dimension_semantics<parallel>], iteration_bounds = array<i64: 2, 1, 1>, scalar_prefetch = 0 : i64, scratch_operands = 0 : i64, tpu.core_type = #tpu.core_type<tc>, window_params = [{transform_indices = @transform_0, window_bounds = array<i64: 1, 8, 8>}, {transform_indices = @transform_1, window_bounds = array<i64: 1, 8, 128>}, {transform_indices = @transform_2, window_bounds = array<i64: 1, 8, 1>}, {transform_indices = @transform_3, window_bounds = array<i64: 1, 1, 128>}, {transform_indices = @transform_4, window_bounds = array<i64: 1, 8, 128>}]} {
    %c0 = arith.constant 0 : index
    %c0_0 = arith.constant 0 : index
    %c0_1 = arith.constant 0 : index
    %0 = vector.load %arg3[%c0, %c0_0, %c0_1] : memref<1x8x8xf32, #tpu.memory_space<vmem>>, vector<1x8x8xf32>
    %1 = vector.shape_cast %0 : vector<1x8x8xf32> to vector<8x8xf32>
    %c0_2 = arith.constant 0 : index
    %c0_3 = arith.constant 0 : index
    %c0_4 = arith.constant 0 : index
    %2 = vector.load %arg4[%c0_2, %c0_3, %c0_4] : memref<1x8x128xf32, #tpu.memory_space<vmem>>, vector<1x8x128xf32>
    %3 = vector.shape_cast %2 : vector<1x8x128xf32> to vector<8x128xf32>
    %cst = arith.constant dense<0.000000e+00> : vector<8x128xf32>
    %4 = tpu.matmul %1, %3, %cst {dimension_numbers = #tpu.dot_dimension_numbers<[1], [0], [0], [1], [0, 0, 1, 1], [], []>} : vector<8x8xf32>, vector<8x128xf32>, vector<8x128xf32> -> vector<8x128xf32>
    %cst_5 = arith.constant 1.000000e-03 : f32
    %5 = vector.broadcast %cst_5 : f32 to vector<8x128xf32>
    %6 = arith.maximumf %4, %5 : vector<8x128xf32>
    %7 = math.sqrt %6 : vector<8x128xf32>
    %c0_6 = arith.constant 0 : index
    %c0_7 = arith.constant 0 : index
    %c0_8 = arith.constant 0 : index
    %8 = vector.load %arg5[%c0_6, %c0_7, %c0_8] : memref<1x8x1xf32, #tpu.memory_space<vmem>>, vector<1x8x1xf32>
    %9 = vector.shape_cast %8 : vector<1x8x1xf32> to vector<8x1xf32>
    %c0_9 = arith.constant 0 : index
    %c0_10 = arith.constant 0 : index
    %c0_11 = arith.constant 0 : index
    %10 = vector.load %arg6[%c0_9, %c0_10, %c0_11] : memref<1x1x128xf32, #tpu.memory_space<vmem>>, vector<1x1x128xf32>
    %11 = vector.shape_cast %10 : vector<1x1x128xf32> to vector<1x128xf32>
    %12 = vector.broadcast %9 : vector<8x1xf32> to vector<8x128xf32>
    %13 = arith.mulf %7, %12 : vector<8x128xf32>
    %14 = vector.broadcast %11 : vector<1x128xf32> to vector<8x128xf32>
    %15 = arith.mulf %13, %14 : vector<8x128xf32>
    %c0_12 = arith.constant 0 : index
    %c0_13 = arith.constant 0 : index
    %c0_14 = arith.constant 0 : index
    %16 = vector.load %arg7[%c0_12, %c0_13, %c0_14] : memref<1x8x128xf32, #tpu.memory_space<vmem>>, vector<1x8x128xf32>
    %17 = vector.shape_cast %16 : vector<1x8x128xf32> to vector<8x128xf32>
    %18 = vector.shape_cast %15 : vector<8x128xf32> to vector<1x8x128xf32>
    tpu.vector_store %arg7[%c0_12, %c0_13, %c0_14], %18 {strides = array<i32>} : memref<1x8x128xf32, #tpu.memory_space<vmem>>, vector<1x8x128xf32>,
    return
  }
  func.func @transform_0(%arg0: i32, %arg1: i32, %arg2: i32) -> (i32, i32, i32) {
    %c0_i32 = arith.constant 0 : i32
    %c0_i32_0 = arith.constant 0 : i32
    return %arg0, %arg1, %c0_i32 : i32, i32, i32
  }
  func.func @transform_1(%arg0: i32, %arg1: i32, %arg2: i32) -> (i32, i32, i32) {
    %c0_i32 = arith.constant 0 : i32
    %c0_i32_0 = arith.constant 0 : i32
    return %arg0, %c0_i32, %arg2 : i32, i32, i32
  }
  func.func @transform_2(%arg0: i32, %arg1: i32, %arg2: i32) -> (i32, i32, i32) {
    %c0_i32 = arith.constant 0 : i32
    %c0_i32_0 = arith.constant 0 : i32
    return %arg0, %arg1, %c0_i32 : i32, i32, i32
  }
  func.func @transform_3(%arg0: i32, %arg1: i32, %arg2: i32) -> (i32, i32, i32) {
    %c0_i32 = arith.constant 0 : i32
    %c0_i32_0 = arith.constant 0 : i32
    return %arg0, %c0_i32, %arg2 : i32, i32, i32
  }
  func.func @transform_4(%arg0: i32, %arg1: i32, %arg2: i32) -> (i32, i32, i32) {
    %c0_i32 = arith.constant 0 : i32
    return %arg0, %arg1, %arg2 : i32, i32, i32
  }
}

</mosaic_0001>

<bundles_post_ra>
// kernel: tpu_custom_call.1
= control target key start
LH: loop header
LB: loop body
LE: loop exit
PB: predicated region body
PF: predicated region fallthrough
CT: control target
= control target key end

     0   :  { %9 = vsyncpa [#allocation3], 0  ;;  %s985_s0 = inlined_call_operand.vmem [shape: f32[2,8,8], index: 0, kind: input, shape index: {}]   ;;  %s986_s1 = inlined_call_operand.hbm [shape: f32[2,8,128], index: 1, kind: input, shape index: {}]   ;;  %s987_s2 = inlined_call_operand.vmem [shape: f32[2,8,1], index: 2, kind: input, shape index: {}]   ;;  %s988_s3 = inlined_call_operand.vmem [shape: f32[2,1,128], index: 3, kind: input, shape index: {}]   ;;  %s989_s4 = inlined_call_operand.hbm [shape: f32[2,8,8], index: 4, kind: output, shape index: {}]  }
   0x1   :  { %11 = vsyncpa [#allocation3 + $0x1], 0 }
   0x2   :  { %12 = vsyncpa [#allocation4], 0 }
   0x3   :  { %14 = vsyncpa [#allocation4 + $0x1], 0  ;;  %s798_s15 = smov 0   ;;  %s800_s16 = smov 0  }
   0x4   :  { %s802_s17 = smov 0   ;;  %s804_s18 = smov 0  }
   0x5   :  { %s806_s19 = smov 0   ;;  %s808_s20 = smov 0  }
   0x6 LB: > { %s562_s21 = sadd.s32 4294967295, %s766_s20   ;;  %s563_s22 = sadd.s32 4294967294, %s766_s20   ;;  %s766_s20 = sphi %s808_s20, %s20_s20   ;;  %s762_s19 = sphi %s806_s19, %s1005_s19   ;;  %s758_s18 = sphi %s804_s18, %s1004_s18   ;;  %s754_s17 = sphi %s802_s17, %s1003_s17   ;;  %s750_s16 = sphi %s800_s16, %s1002_s16   ;;  %s746_s15 = sphi %s798_s15, %s1001_s15  }
   0x7   : > { %s39_s23 = sadd.s32 1, %s762_s19  ;;  %s76_s24 = sadd.s32 1, %s754_s17 }
   0x8   : > { %p41_p0 = scmp.ge.s32.totalorder %s39_s23, 2  ;;  %p83_p1 = scmp.ne.s32.totalorder %s754_s17, %s750_s16 }
   0x9   : > { %p84_p2 = scmp.eq.s32.totalorder %s766_s20, 0  ;;  %p89_p3 = scmp.ne.s32.totalorder %s750_s16, %s746_s15 }
   0xa   : > { %s1007_s23 = smov (%p41_p0, %s39_s23), 0  ;;  %p90_p5 = scmp.eq.s32.totalorder %s562_s21, 0 }
   0xb   : > { %p839_p4 = por %p84_p2, %p83_p1  ;;  %s71_s26 = ssub.s32 %s762_s19, %s1007_s23 }
   0xc   : > { %p173_p6 = scmp.eq.s32.totalorder %s562_s21, 1  ;;  %p74_p7 = scmp.eq.s32.totalorder %s71_s26, 0 }
   0xd   : > { %p845_p8 = por %p90_p5, %p89_p3  ;;  %p179_p10 = scmp.eq.s32.totalorder %s563_s22, 1 }
   0xe   : > { %p849_p9 = por %p173_p6, %p83_p1  ;;  %p598_p13 = scmp.lt.s32.totalorder %s766_s20, 2 }
   0xf   : > { %s854_s29 = scalar_select %p74_p7, %s754_s17, %s76_s24  }
  0x10   : > { %s993_s28 = scalar_select %p849_p9, 1, 0 }
  0x11   : > { %p856_p11 = por %p179_p10, %p89_p3  ;;  %s209_s5 = sand.u32 1, %s754_s17  }
  0x12   : > { %s566_s6 = sshll.u32 %s209_s5, 3  ;;  %s567_s7 = sshll.u32 %s762_s19, 7 }
  0x13   : > { %s994_s30 = scalar_select %p856_p11, 1, 0 }
  0x14   : > { %s867_s10 = scalar_lea.hbm %s986_s1, %s567_s7  ;;  %s213_s11 = scalar_lea.vmem [#allocation2], %s566_s6 }
  0x15   : > { %s221_s12 = sshll.u32 %s213_s11, 4  ;;  %p873_p0 = pnand %p598_p13, %p839_p4  ;;  %s869_s12 = int_to_ptr.vmem [resolvable:$true] %s221_s12 }
  0x16   : > { %s210_s14 = scalar_lea.sflag [#allocation3], %s209_s5  ;;  %s654_s21 = scalar_lea.hbm %s867_s10, 128 }
  0x17   : > { %p655_p3 = scmp.ne.s32.totalorder %s867_s10, %s654_s21  ;;  %p656_p5 = pneg %p873_p0 }
  0x18   : > { %s659_s25 = scalar_lea.hbm %s986_s1, 256  ;;  %p660_p4 = scmp.lt.u32.totalorder %s867_s10, %s986_s1 }
  0x19   : > { %p657_p6 = pnand %p656_p5, %p655_p3  ;;  %p661_p10 = scmp.lt.u32.totalorder %s659_s25, %s654_s21 }
  0x1a   : > { %p663_p12 = scmp.lt.u32.totalorder %s654_s21, %s867_s10 }
  0x1b   : > { %p658_p7 = pneg %p657_p6  ;;  %p662_p13 = por %p661_p10, %p660_p4 }
  0x1d   : > { %p664_p1 = por %p663_p12, %p662_p13 }
  0x1f   : > { %p665_p2 = pnand %p664_p1, %p658_p7 }
  0x21   : > { %668 = shalt.err (!%p665_p2)
}
  0x22   : > { %s669_s5 = scalar_lea.vmem %s869_s12, 128  ;;  %s768_s7 = smov [#allocation2]  }
  0x23   : > { %p670_p3 = scmp.ne.s32.totalorder %s869_s12, %s669_s5  ;;  %s674_s8 = sshll.u32 %s768_s7, 4  ;;  %s675_s8 = int_to_ptr.vmem [resolvable:$false] %s674_s8 }
  0x24   : > { %s676_s9 = scalar_lea.vmem %s675_s8, 256  ;;  %p677_p9 = scmp.lt.s32.totalorder %s869_s12, %s675_s8 }
  0x25   : > { %p672_p6 = pnand %p670_p3, %p656_p5  ;;  %p678_p4 = scmp.lt.s32.totalorder %s676_s9, %s669_s5 }
  0x27   : > { %p673_p11 = pneg %p672_p6  ;;  %p679_p10 = por %p678_p4, %p677_p9 }
  0x29   : > { %p680_p12 = pnand %p679_p10, %p673_p11 }
  0x2b   : > { %683 = shalt.err (!%p680_p12)
}
  0x2c   : > { %593 = dma.hbm_to_vmem [thread:$0]  (!%p873_p0), %s867_s10, 128, %s869_s12, %s210_s14  }
  0x2d   : > { %p996_p1 = scmp.lt.s32.totalorder %s766_s20, 3  ;;  %p997_p2 = scmp.ge.s32.totalorder %s766_s20, 1 }
  0x2f   : > { %p246_p5 = pnand %p997_p2, %p996_p1 }
  0x30   : > { %s909_s11 = sand.u32 (!%p246_p5), 1, %s750_s16  }
  0x31   : > { %249 = sbr.rel (%p246_p5) target bundleno = 311 (0x137), region = 36  ;;  %s569_s21 = sshll.u32 (!%p246_p5), %s909_s11, 3 }
  0x32   : > { %s252_s22 = scalar_lea.sflag (!%p246_p5), [#allocation3], %s909_s11  ;;  %s255_s13 = scalar_lea.vmem (!%p246_p5), [#allocation2], %s569_s21 }
  0x38   : > { %737 = dma.done.wait (%p845_p8), %s252_s22, 128  }
  0x39   : > { %739 = vsyncadd (%p845_p8), %s252_s22, 4294967168  ;;  %p300_p9 = scmp.lt.s32.totalorder %s758_s18, 1  ;;  %v769_v0 = vmov 0.0   ;;  %vm770_vm0 = vmmov 0   ;;  %v771_v1 = vmov 0   ;;  %vm322_vm1 = vcmask 64512  }
  0x3a   : > { %581 = vmatprep.subr.mxu0 %v769_v0  ;;  %583 = vmatprep.mubr.msk.f32.mxu0 %vm770_vm0, %v769_v0  ;;  %v321_v2 = vld [vmem:[%s255_s13] sm:$0xff]  ;;  %s576_s9 = sshll.u32 %s758_s18, 7  ;;  %s299_s22 = scalar_lea.vmem [#allocation5], %s569_s21 }
  0x3b   : > { %s301_s10 = scalar_select %p300_p9, %s758_s18, 1  ;;  %651 = vset.pattern.permute.xlu0 %v771_v1  ;;  %582 = vmatpush3.msra.mxu0 %v321_v2 }
  0x3c   : > { %s436_s13 = sshll.u32 %s299_s22, 4  ;;  %s421_s24 = scalar_lea.sflag [#allocation4], %s909_s11  ;;  %s938_s13 = int_to_ptr.vmem [resolvable:$true] %s436_s13 }
  0x3d   : > { %s571_s12 = sshll.u32 %s301_s10, 3  ;;  %s319_s8 = scalar_lea.vmem %s988_s3, %s301_s10 }
  0x3e   : > { %s306_s25 = scalar_lea.vmem %s985_s0, %s571_s12  ;;  %s313_s27 = scalar_lea.vmem %s987_s2, %s571_s12  ;;  %v574_v13 = vld [vmem:[%s319_s8] ss:$0 sm:$0xff] }
  0x3f   : > { %v320_v3 = vld [vmem:[%s306_s25] sm:$0xff]  ;;  %s936_s10 = scalar_lea.hbm %s989_s4, %s576_s9  ;;  %s684_s25 = scalar_lea.vmem %s938_s13, 128 }
  0x40   : > { %v404_v4 = vld [vmem:[%s313_s27] sm:$0xff]  ;;  %584 = vmatmul.mubr.msk.f32.vlgmr.msra.gmra.mrb[0].mxu0 %vm322_vm1, %v320_v3  ;;  %p685_p8 = scmp.ne.s32.totalorder %s938_s13, %s684_s25  ;;  %p998_p11 = scmp.ne.s32.totalorder %s993_s28, 0 }
  0x41   : > { %408 = vperm.xlu0 %651, %v404_v4   ;;  %s772_s18 = smov [#allocation5]  }
  0x42   : > { %p686_p0 = pnand %p685_p8, %p998_p11  ;;  %s688_s21 = sshll.u32 %s772_s18, 4  ;;  %s689_s21 = int_to_ptr.vmem [resolvable:$false] %s688_s21 }
  0x43   : > { %s690_s26 = scalar_lea.vmem %s689_s21, 256  ;;  %p691_p13 = scmp.lt.s32.totalorder %s938_s13, %s689_s21 }
  0x44   : > { %p687_p7 = pneg %p686_p0  ;;  %p692_p3 = scmp.lt.s32.totalorder %s690_s26, %s684_s25 }
  0x46   : > { %p693_p6 = por %p692_p3, %p691_p13 }
  0x48   : > { %p694_p4 = pnand %p693_p6, %p687_p7 }
  0xc0   : > { %v409_v10 = vpop.permute.xlu0 %408 }
 0x113   : > { %v392_v5 = vpop.f32.mrb[0].mxu0 }
 0x114   : > { %v396_v6 = vmax.f32 %v392_v5, 0.001  ;;  %v585_v7 = vpop.f32.mrb[1].mxu0 }
 0x116   : > { %652 = vrsqrt.f32 %v396_v6  ;;  %vm399_vm2 = vcmp.eq.f32.partialorder %v396_v6, inf  ;;  %v402_v11 = vand.u32 2147483648, %v396_v6  ;;  %vm401_vm3 = vcmp.eq.f32.partialorder %v396_v6, 0.0 }
 0x120   : > { %v653_v8 = vpop.eup %652 }
 0x121   : > { %v398_v9 = vmul.f32 %v653_v8, %v396_v6 }
 0x123   : > { %v400_v12 = vsel %vm399_vm2, %v396_v6, %v398_v9 }
 0x124   : > { %v403_v14 = vsel %vm401_vm3, %v402_v11, %v400_v12 }
 0x125   : > { %v411_v15 = vmul.f32 %v409_v10, %v403_v14 }
 0x127   : > { %v418_v16 = vmul.f32 %v574_v13, %v411_v15 }
 0x129   : > { %419 = vst [vmem:[%s299_s22] sm:$0xff] %v418_v16 }
 0x12a   : > { %697 = shalt.err (!%p694_p4)
}
 0x12b   : > { %s698_s11 = scalar_lea.hbm %s936_s10, 128  ;;  %s702_s5 = scalar_lea.hbm %s989_s4, 256 }
 0x12c   : > { %p699_p10 = scmp.ne.s32.totalorder %s936_s10, %s698_s11  ;;  %p703_p2 = scmp.lt.u32.totalorder %s936_s10, %s989_s4 }
 0x12d   : > { %p704_p5 = scmp.lt.u32.totalorder %s702_s5, %s698_s11  ;;  %p706_p8 = scmp.lt.u32.totalorder %s698_s11, %s936_s10 }
 0x12e   : > { %p700_p12 = pnand %p699_p10, %p998_p11 }
 0x12f   : > { %p705_p9 = por %p704_p5, %p703_p2 }
 0x130   : > { %p701_p1 = pneg %p700_p12 }
 0x131   : > { %p707_p0 = por %p706_p8, %p705_p9 }
 0x133   : > { %p708_p7 = pnand %p707_p0, %p701_p1 }
 0x135   : > { %711 = shalt.err (!%p708_p7)
}
 0x136   : > { %588 = dma.vmem_to_hbm [thread:$0]  (%p998_p11), %s938_s13, 128, %s936_s10, %s421_s24  }
 0x137 PF: > { %s448_s9 = sand.u32 1, %s746_s15   ;;  %p999_p13 = scmp.ne.s32.totalorder %s994_s30, 0 }
 0x138   : > { %p1000_p3 = scmp.ge.s32.totalorder %s766_s20, 2  ;;  %s449_s22 = scalar_lea.sflag [#allocation4], %s448_s9 }
 0x13a   : > { %p595_p6 = pnand %p1000_p3, %p999_p13 }
 0x13c   : > { %741 = dma.done.wait (!%p595_p6), %s449_s22, 128  }
 0x13d   : > { %743 = vsyncadd (!%p595_p6), %s449_s22, 4294967168  ;;  %s20_s20 = sadd.s32 1, %s766_s20   ;;  %s1001_s15 = smov %s750_s16 }
 0x13e   : > { %p17_p4 = scmp.ge.s32.totalorder %s20_s20, 4   ;;  %s1002_s16 = smov %s754_s17 }
 0x13f   : > { %s1003_s17 = smov %s854_s29  ;;  %s1004_s18 = smov %s762_s19 }
 0x140   : > { %s1005_s19 = smov %s1007_s23  ;;  %19 = sbr.rel (!%p17_p4) target bundleno = 6 (0x6), region = 90 }
 0x147   :  { %454 = vsyncpa [#allocation3], 1 }
 0x148   :  { %456 = vsyncpa [#allocation3 + $0x1], 1 }
 0x149   :  { %457 = vsyncpa [#allocation4], 1 }
 0x14a   :  { %459 = vsyncpa [#allocation4 + $0x1], 1 }

</bundles_post_ra>
